<compile_context>
chip_gen: v7x
topology: tpu7x:2x2x1
jax: 0.10.0
libtpu: 0.0.40
codegen_flags: <defaults>
</compile_context>

<pallas_src>
import jax
import jax.numpy as jnp
from jax.experimental import pallas as pl
from jax.experimental.pallas import tpu as pltpu


# ---------------------------------------------------------------------------
# Tiling / VMEM helpers
# ---------------------------------------------------------------------------
_TARGET_ITEMS_TILE_BYTES = 8 << 20   # ~8 MiB items tile -> ~16 MiB double-buffered
_VMEM_CAP_BYTES = 46 << 20           # portable: v7x has 64 MiB/TC, v5e/v6e 128 MiB


def _estimate_vmem_bytes(block_b, L, D, itemsize, n_label_inputs):
    """Double-buffered I/O tiles + in-kernel f32 intermediates + headroom."""
    io = 2 * block_b * (D + L * D + n_label_inputs * L) * itemsize   # inputs (x2 buffers)
    io += 2 * block_b * L * 4                                        # output tile (x2 buffers)
    inter = 10 * block_b * L * 4 + 2 * block_b * D * 4               # scores/log_p/t/log_t/...
    return io + inter + (2 << 20)                                    # headroom


def _choose_block_b(B, L, D, itemsize, n_label_inputs):
    per_row = max(1, L * D * itemsize)
    rows = max(1, _TARGET_ITEMS_TILE_BYTES // per_row)
    # Single exact tile covering the whole batch: no padding, no partial block.
    if rows >= B and _estimate_vmem_bytes(B, L, D, itemsize, n_label_inputs) <= _VMEM_CAP_BYTES:
        return B
    # Otherwise sublane-aligned tiles; Pallas masks the trailing partial block.
    block_b = max(8, (min(rows, B) // 8) * 8)
    while block_b > 8 and _estimate_vmem_bytes(block_b, L, D, itemsize,
                                               n_label_inputs) > _VMEM_CAP_BYTES:
        block_b = max(8, ((block_b // 2) // 8) * 8)
    # TODO(synk): if even an 8-row tile overflows the cap (very large L*D), add an
    # L grid axis for the scores kernel and an online-softmax L loop for the loss.
    return block_b


def _vmem_limit(block_b, L, D, itemsize, n_label_inputs):
    est = _estimate_vmem_bytes(block_b, L, D, itemsize, n_label_inputs)
    return int(min(max(est, 16 << 20), 48 << 20))


def _tile_scores(user_ref, items_ref):
    """scores[b, l] = sum_d user[b, d] * items[b, l, d], on the MXU.

    Batched matmul with M=1 (flash-attention 'bqd,bkd->bqk' pattern); inputs stay
    in their streamed dtype (f32 or bf16) and accumulate in f32 on the MXU, so no
    upcast copy of the items tile and no XLU lane reductions.
    """
    u = user_ref[...][:, None, :]                                     # (TB, 1, D)
    s = jnp.einsum("bqd,bkd->bqk", u, items_ref[...],
                   preferred_element_type=jnp.float32)                # (TB, 1, L)
    return s[:, 0, :]                                                 # (TB, L) f32


# ---------------------------------------------------------------------------
# Kernel 1: inference path -> per-list interaction scores (B, L)
# ---------------------------------------------------------------------------
def _scores_kernel(user_ref, items_ref, out_ref):
    out_ref[...] = _tile_scores(user_ref, items_ref).astype(out_ref.dtype)


def listwise_scores(user_embedding, list_item_embedding):
    B, D = user_embedding.shape
    _, L, _ = list_item_embedding.shape
    itemsize = int(jnp.dtype(list_item_embedding.dtype).itemsize)

    block_b = _choose_block_b(B, L, D, itemsize, n_label_inputs=0)
    grid = (pl.cdiv(B, block_b),)

    return pl.pallas_call(
        _scores_kernel,
        out_shape=jax.ShapeDtypeStruct((B, L), jnp.float32),
        grid_spec=pltpu.PrefetchScalarGridSpec(
            num_scalar_prefetch=0,
            grid=grid,
            in_specs=[
                pl.BlockSpec((block_b, D), lambda i: (i, 0)),
                pl.BlockSpec((block_b, L, D), lambda i: (i, 0, 0)),
            ],
            out_specs=pl.BlockSpec((block_b, L), lambda i: (i, 0)),
        ),
        compiler_params=pltpu.CompilerParams(
            dimension_semantics=("parallel",),
            vmem_limit_bytes=_vmem_limit(block_b, L, D, itemsize, 0),
        ),
        cost_estimate=pl.CostEstimate(
            flops=2 * B * L * D,
            transcendentals=0,
            bytes_accessed=int(itemsize * (B * D + B * L * D) + 4 * B * L),
        ),
    )(user_embedding, list_item_embedding)


# ---------------------------------------------------------------------------
# Kernel 2: training path -> fused scores + log_softmax + softmax(label) + KL.
# Emits per-row KL (B, 1); batchmean reduction (sum / B) happens in the wrapper
# so the batch grid axis stays fully parallel (uses both v7x TensorCores).
# ---------------------------------------------------------------------------
def _loss_kernel(user_ref, items_ref, label_ref, out_ref):
    scores = _tile_scores(user_ref, items_ref)                        # (TB, L) f32

    # log_softmax(scores, dim=-1)
    m = jnp.max(scores, axis=-1, keepdims=True)
    z = scores - m
    lse = jnp.log(jnp.sum(jnp.exp(z), axis=-1, keepdims=True))
    log_p = z - lse                                                   # (TB, L)

    # softmax(label, dim=-1), kept in log space (no divide, no extra log)
    lab = label_ref[...].astype(jnp.float32)
    lm = jnp.max(lab, axis=-1, keepdims=True)
    lz = lab - lm
    l_lse = jnp.log(jnp.sum(jnp.exp(lz), axis=-1, keepdims=True))
    log_t = lz - l_lse                                                # (TB, L)
    t = jnp.exp(log_t)                                                # (TB, L), > 0

    # KLDiv with log-space input: per-row sum of t * (log t - log_p)
    out_ref[...] = jnp.sum(t * (log_t - log_p), axis=-1, keepdims=True)  # (TB, 1)


def listwise_loss(user_embedding, list_item_embedding, label):
    B, D = user_embedding.shape
    _, L, _ = list_item_embedding.shape
    itemsize = int(jnp.dtype(list_item_embedding.dtype).itemsize)

    block_b = _choose_block_b(B, L, D, itemsize, n_label_inputs=1)
    grid = (pl.cdiv(B, block_b),)

    per_row = pl.pallas_call(
        _loss_kernel,
        out_shape=jax.ShapeDtypeStruct((B, 1), jnp.float32),
        grid_spec=pltpu.PrefetchScalarGridSpec(
            num_scalar_prefetch=0,
            grid=grid,
            in_specs=[
                pl.BlockSpec((block_b, D), lambda i: (i, 0)),
                pl.BlockSpec((block_b, L, D), lambda i: (i, 0, 0)),
                pl.BlockSpec((block_b, L), lambda i: (i, 0)),
            ],
            out_specs=pl.BlockSpec((block_b, 1), lambda i: (i, 0)),
        ),
        compiler_params=pltpu.CompilerParams(
            dimension_semantics=("parallel",),
            vmem_limit_bytes=_vmem_limit(block_b, L, D, itemsize, 1),
        ),
        cost_estimate=pl.CostEstimate(
            flops=2 * B * L * D + 10 * B * L,
            transcendentals=2 * B * L + 4 * B,
            bytes_accessed=int(itemsize * (B * D + B * L * D + B * L) + 4 * B),
        ),
    )(user_embedding, list_item_embedding, label)

    return jnp.sum(per_row) / B                                       # batchmean


def listwise_forward(user_embedding, list_item_embedding, label=None):
    """Mirror of ListWise.forward."""
    if label is not None:
        return listwise_loss(user_embedding, list_item_embedding, label)
    return listwise_scores(user_embedding, list_item_embedding)


# ---------------------------------------------------------------------------
# Pure-JAX reference (mirrors the PyTorch module)
# ---------------------------------------------------------------------------
def _ref_scores(user, items):
    return jnp.einsum("bd,bld->bl", user, items)


def _ref_loss(user, items, label):
    scores = _ref_scores(user, items)
    log_p = jax.nn.log_softmax(scores, axis=-1)
    t = jax.nn.softmax(label, axis=-1)
    log_t = jax.nn.log_softmax(label, axis=-1)
    return jnp.sum(t * (log_t - log_p)) / user.shape[0]


if __name__ == "__main__":
    key = jax.random.PRNGKey(0)
    k1, k2, k3 = jax.random.split(key, 3)

    B, L, D = 2, 8, 32
    user = jax.random.normal(k1, (B, D), dtype=jnp.float32)
    items = jax.random.normal(k2, (B, L, D), dtype=jnp.float32)
    label = jax.random.normal(k3, (B, L), dtype=jnp.float32)

    # inference path (f32, exact vs reference)
    scores = listwise_forward(user, items)
    jax.block_until_ready(scores)
    ref_s = _ref_scores(user, items)
    assert scores.shape == (B, L)
    assert jnp.allclose(scores, ref_s, atol=1e-4, rtol=1e-4)

    # training path (KLDivLoss, batchmean)
    loss = listwise_forward(user, items, label)
    jax.block_until_ready(loss)
    ref_l = _ref_loss(user, items, label)
    assert jnp.allclose(loss, ref_l, atol=1e-4, rtol=1e-4)

    # bf16 streaming path: halves HBM traffic on the bandwidth-bound items
    # stream; the kernels accumulate in f32 (loose tolerance vs f32 reference).
    user_bf = user.astype(jnp.bfloat16)
    items_bf = items.astype(jnp.bfloat16)
    label_bf = label.astype(jnp.bfloat16)
    scores_bf = listwise_forward(user_bf, items_bf)
    loss_bf = listwise_forward(user_bf, items_bf, label_bf)
    jax.block_until_ready((scores_bf, loss_bf))
    assert jnp.allclose(scores_bf, ref_s, atol=0.15, rtol=0.05)
    assert jnp.allclose(loss_bf, ref_l, atol=0.1, rtol=0.15)

    print("KERNEL_OK")
</pallas_src>

<mosaic_0001>
module attributes {stable_mosaic.version = 11 : i64} {
  func.func @_scores_kernel(%arg0: i32, %arg1: memref<2x32xf32, #tpu.memory_space<vmem>>, %arg2: memref<2x8x32xf32, #tpu.memory_space<vmem>>, %arg3: memref<2x8xf32, #tpu.memory_space<vmem>>) attributes {dimension_semantics = [#tpu.dimension_semantics<parallel>], iteration_bounds = array<i64: 1>, scalar_prefetch = 0 : i64, scratch_operands = 0 : i64, tpu.core_type = #tpu.core_type<tc>, window_params = [{transform_indices = @transform_0, window_bounds = array<i64: 2, 32>}, {transform_indices = @transform_1, window_bounds = array<i64: 2, 8, 32>}, {transform_indices = @transform_2, window_bounds = array<i64: 2, 8>}]} {
    %c0 = arith.constant 0 : index
    %c0_0 = arith.constant 0 : index
    %0 = vector.load %arg1[%c0, %c0_0] : memref<2x32xf32, #tpu.memory_space<vmem>>, vector<2x32xf32>
    %1 = vector.shape_cast %0 : vector<2x32xf32> to vector<2x1x32xf32>
    %c0_1 = arith.constant 0 : index
    %c0_2 = arith.constant 0 : index
    %c0_3 = arith.constant 0 : index
    %2 = vector.load %arg2[%c0_1, %c0_2, %c0_3] : memref<2x8x32xf32, #tpu.memory_space<vmem>>, vector<2x8x32xf32>
    "tpu.trace_start"() <{level = 10 : i32, message = "bqd,bkd->bqk"}> : () -> ()
    %cst = arith.constant dense<0.000000e+00> : vector<2x1x8xf32>
    %3 = tpu.matmul %1, %2, %cst {dimension_numbers = #tpu.dot_dimension_numbers<[2], [2], [1], [1], [0, 0, 0, 1, 1, 1], [0], [0]>} : vector<2x1x32xf32>, vector<2x8x32xf32>, vector<2x1x8xf32> -> vector<2x1x8xf32>
    "tpu.trace_stop"() : () -> ()
    %4 = vector.shape_cast %3 : vector<2x1x8xf32> to vector<2x8xf32>
    %c0_4 = arith.constant 0 : index
    %c0_5 = arith.constant 0 : index
    %5 = vector.load %arg3[%c0_4, %c0_5] : memref<2x8xf32, #tpu.memory_space<vmem>>, vector<2x8xf32>
    tpu.vector_store %arg3[%c0_4, %c0_5], %4 {strides = array<i32>} : memref<2x8xf32, #tpu.memory_space<vmem>>, vector<2x8xf32>,
    return
  }
  func.func @transform_0(%arg0: i32) -> (i32, i32) {
    %c0_i32 = arith.constant 0 : i32
    %c0_i32_0 = arith.constant 0 : i32
    return %arg0, %c0_i32 : i32, i32
  }
  func.func @transform_1(%arg0: i32) -> (i32, i32, i32) {
    %c0_i32 = arith.constant 0 : i32
    %c0_i32_0 = arith.constant 0 : i32
    %c0_i32_1 = arith.constant 0 : i32
    return %arg0, %c0_i32, %c0_i32_0 : i32, i32, i32
  }
  func.func @transform_2(%arg0: i32) -> (i32, i32) {
    %c0_i32 = arith.constant 0 : i32
    %c0_i32_0 = arith.constant 0 : i32
    return %arg0, %c0_i32 : i32, i32
  }
}

</mosaic_0001>

<bundles_post_ra>
// kernel: tpu_custom_call.1
= control target key start
LH: loop header
LB: loop body
LE: loop exit
PB: predicated region body
PF: predicated region fallthrough
CT: control target
= control target key end

     0   :  { %7 = vsyncpa [#allocation3], 0  ;;  %s404_s0 = inlined_call_operand.hbm [shape: f32[2,32], index: 0, kind: input, shape index: {}]   ;;  %s405_s1 = inlined_call_operand.hbm [shape: f32[2,8,32], index: 1, kind: input, shape index: {}]   ;;  %s406_s2 = inlined_call_operand.hbm [shape: f32[2,8], index: 2, kind: output, shape index: {}]  }
   0x1   :  { %8 = vsyncpa [#allocation6], 0 }
   0x2   :  { %9 = vsyncpa [#allocation4], 0  ;;  %s338_s9 = smov [#allocation2]   ;;  %s339_s11 = smov [#allocation5]  }
   0x3   :  { %s16_s10 = sshll.u32 %s338_s9, 4  ;;  %s25_s12 = sshll.u32 %s339_s11, 4  ;;  %s17_s10 = int_to_ptr.vmem [resolvable:$true] %s16_s10  ;;  %s361_s12 = int_to_ptr.vmem [resolvable:$true] %s25_s12 }
   0x4   :  { %s266_s15 = scalar_lea.hbm %s404_s0, 32 }
   0x5   :  { %p267_p0 = scmp.ne.s32.totalorder %s404_s0, %s266_s15  ;;  %p270_p1 = scmp.lt.u32.totalorder %s266_s15, %s404_s0 }
   0x7   :  { %p272_p2 = pnand %p270_p1, %p267_p0 }
   0x9   :  { %275 = shalt.err (!%p272_p2)
}
   0xa   :  { %s276_s20 = scalar_lea.vmem %s17_s10, 32  ;;  %p281_p4 = scmp.lt.s32.totalorder %s17_s10, %s17_s10 }
   0xb   :  { %p277_p3 = scmp.ne.s32.totalorder %s17_s10, %s276_s20  ;;  %p282_p5 = scmp.lt.s32.totalorder %s276_s20, %s276_s20 }
   0xd   :  { %p283_p6 = por %p282_p5, %p281_p4 }
   0xf   :  { %p284_p7 = pnand %p283_p6, %p277_p3 }
  0x11   :  { %287 = shalt.err (!%p284_p7)
}
  0x12   :  { %19 = dma.hbm_to_vmem [thread:$0]  %s404_s0, 32, %s17_s10, [#allocation3]  }
  0x13   :  { %s288_s25 = scalar_lea.hbm %s405_s1, 256 }
  0x14   :  { %p289_p8 = scmp.ne.s32.totalorder %s405_s1, %s288_s25  ;;  %p292_p9 = scmp.lt.u32.totalorder %s288_s25, %s405_s1 }
  0x16   :  { %p294_p10 = pnand %p292_p9, %p289_p8 }
  0x18   :  { %297 = shalt.err (!%p294_p10)
}
  0x19   :  { %s298_s30 = scalar_lea.vmem %s361_s12, 256  ;;  %p303_p12 = scmp.lt.s32.totalorder %s361_s12, %s361_s12 }
  0x1a   :  { %p299_p11 = scmp.ne.s32.totalorder %s361_s12, %s298_s30  ;;  %p304_p13 = scmp.lt.s32.totalorder %s298_s30, %s298_s30 }
  0x1c   :  { %p305_p0 = por %p304_p13, %p303_p12 }
  0x1e   :  { %p306_p1 = pnand %p305_p0, %p299_p11 }
  0x20   :  { %309 = shalt.err (!%p306_p1)
}
  0x21   :  { %s340_s0 = smov 128   ;;  %s341_s3 = smov 8  }
  0x22   :  { %31 = dma.hbm_to_vmem [thread:$0]  %s405_s1, 256, %s361_s12, [#allocation6], %s340_s0, %s340_s0, %s341_s3  }
  0x23   :  { %332 = dma.done.wait [#allocation3], 32  }
  0x24   :  { %333 = vsyncadd [#allocation3], 4294967264 }
  0x25   :  { %334 = dma.done.wait [#allocation6], 256  }
  0x26   :  { %335 = vsyncadd [#allocation6], 4294967040  ;;  %v51_v0 = vlaneseq  ;;  %v342_v1 = vmov 0.0   ;;  %vm343_vm0 = vmmov 0   ;;  %v344_v2 = vmov 1966171168  }
  0x27   :  { %253 = vmatprep.subr.mxu1 %v342_v1  ;;  %248 = vmatprep.subr.mxu0 %v342_v1  ;;  %v49_v3 = vunpack.c.l.s4 %v344_v2  ;;  %vm64_vm1 = vcmask 261120   ;;  %v63_v7 = vld [vmem:[#allocation5 + $0x8] sm:$0xff]  ;;  %v62_v8 = vld [vmem:[#allocation5] sm:$0xff]  ;;  %s345_s1 = smov [#allocation7]   ;;  %vm218_vm2 = vcmask 1041409   ;;  %vm221_vm3 = vcmask 58368  }
  0x28   :  { %255 = vmatprep.mubr.msk.f32.mxu1 %vm343_vm0, %v342_v1  ;;  %250 = vmatprep.mubr.msk.f32.mxu0 %vm343_vm0, %v342_v1  ;;  %v52_v4 = vshrl.u32 %v51_v0, 7  ;;  %v239_v9 = vld.sshfl [vmem:[#allocation2] sm:$0x11 pattern:$0x75316420]  ;;  %s229_s6 = sshll.u32 %s345_s1, 4  ;;  %s230_s6 = int_to_ptr.vmem [resolvable:$true] %s229_s6 }
  0x29   :  { %v50_v5 = vunpack.c.0.s8 %v49_v3  ;;  %254 = vmatpush3.xpose.msk.msra.mxu1 %vm64_vm1, %v63_v7  ;;  %249 = vmatpush3.xpose.msk.msra.mxu0 %vm64_vm1, %v62_v8  ;;  %v47_v10 = vcombine.high %v239_v9, %v239_v9  ;;  %s310_s7 = scalar_lea.vmem %s230_s6, 32  ;;  %p315_p3 = scmp.lt.s32.totalorder %s230_s6, %s230_s6 }
  0x2a   :  { %p311_p2 = scmp.ne.s32.totalorder %s230_s6, %s310_s7  ;;  %p316_p4 = scmp.lt.s32.totalorder %s310_s7, %s310_s7 }
  0x2b   :  { %v53_v6 = vsub.s32 %v50_v5, %v52_v4 }
  0x2c   :  { %p317_p5 = por %p316_p4, %p315_p3 }
  0x2d   :  { %v54_v11 = vrot.slane %v239_v9, %v53_v6  ;;  %v61_v12 = vrot.slane %v47_v10, %v53_v6 }
  0x2e   :  { %p318_p6 = pnand %p317_p5, %p311_p2 }
  0x2f   :  { %251 = vmatmul.mubr.msk.f32.vlgmr.msra.gmra.mrb[0].mxu0 %vm64_vm1, %v54_v11  ;;  %256 = vmatmul.mubr.msk.f32.vlgmr.msra.gmra.mrb[0].mxu1 %vm64_vm1, %v61_v12 }
 0x102   :  { %v136_v13 = vpop.f32.mrb[0].mxu0  ;;  %v211_v14 = vpop.f32.mrb[0].mxu1 }
 0x103   :  { %v252_v15 = vpop.f32.mrb[1].mxu0  ;;  %v217_v16 = vrot.slane %v211_v14, 7  ;;  %v257_v17 = vpop.f32.mrb[1].mxu1 }
 0x105   :  { %v219_v18 = vsel %vm218_vm2, %v217_v16, %v136_v13 }
 0x106   :  { %222 = vst.msk [vmem:[#allocation7] sm:$0x3] %vm221_vm3, %v219_v18 }
 0x107   :  { %321 = shalt.err (!%p318_p6)
}
 0x108   :  { %s322_s10 = scalar_lea.hbm %s406_s2, 32 }
 0x109   :  { %p323_p7 = scmp.ne.s32.totalorder %s406_s2, %s322_s10  ;;  %p326_p8 = scmp.lt.u32.totalorder %s322_s10, %s406_s2 }
 0x10b   :  { %p328_p9 = pnand %p326_p8, %p323_p7 }
 0x10d   :  { %331 = shalt.err (!%p328_p9)
}
 0x10e   :  { %232 = dma.vmem_to_hbm [thread:$0]  %s230_s6, 32, %s406_s2, [#allocation4]  }
 0x10f   :  { %336 = dma.done.wait [#allocation4], 32  }
 0x110   :  { %337 = vsyncadd [#allocation4], 4294967264 }
 0x111   :  { %236 = vsyncpa [#allocation3], 1 }
 0x112   :  { %237 = vsyncpa [#allocation6], 1 }
 0x113   :  { %238 = vsyncpa [#allocation4], 1 }

</bundles_post_ra>
